<compile_context>
chip_gen: v5e
topology: v5e:2x2
jax: 0.10.0
libtpu: 0.0.40
codegen_flags: <defaults>
</compile_context>

<pallas_src>
import functools

import jax
import jax.numpy as jnp
from jax import lax
from jax.experimental import pallas as pl
from jax.experimental.pallas import tpu as pltpu

EPS = 1e-5
EXPANSION = 4
LANE = 128
_VMEM_LIMIT = 32 * 1024 * 1024  # safe on v5e/v6e/v7x


# ---------------------------------------------------------------------------
# Small helpers
# ---------------------------------------------------------------------------
def _round_up(x, m):
    return (x + m - 1) // m * m


def _pad_channels(a, c_pad):
    """Zero-pad the last (channel) axis to c_pad."""
    if a.shape[-1] == c_pad:
        return a
    cfg = [(0, 0)] * (a.ndim - 1) + [(0, c_pad - a.shape[-1])]
    return jnp.pad(a, cfg)


def _pad_rows(a, m_pad):
    if a.shape[0] == m_pad:
        return a
    return jnp.pad(a, ((0, m_pad - a.shape[0]), (0, 0)))


def _m_tiling(m):
    """Pick (row-tile, padded-M); prefer >=2 blocks to feed both v7x cores."""
    for tm in (512, 256, 128):
        if m % tm == 0 and m // tm >= 2:
            return tm, m
    if m > 512:
        return 512, _round_up(m, 512)
    m_pad = _round_up(m, 8)
    return m_pad, m_pad


def _row_chunk(h, w_row, n_batch):
    """Row-chunk height for the 3x3 conv: largest divisor of h that keeps the
    f32 accumulator around <=256 rows; if the batch is 1, also force >=2 row
    chunks so the 'parallel' grid has work for both v7x TensorCores."""
    target = max(1, 256 // w_row)
    if n_batch < 2 and h >= 2:
        target = min(target, max(1, h // 2))
    best = 1
    for d in range(1, h + 1):
        if h % d == 0 and d <= target:
            best = d
    return best


def _params(semantics):
    return pltpu.CompilerParams(dimension_semantics=semantics,
                                vmem_limit_bytes=_VMEM_LIMIT)


# ---------------------------------------------------------------------------
# Pallas kernels
# ---------------------------------------------------------------------------
def _matmul_bn_kernel(x_ref, w_ref, s_ref, b_ref, o_ref, *, relu):
    """out = relu?((x @ w) * scale + bias); bf16 operands, f32 accumulate."""
    acc = jnp.dot(x_ref[...], w_ref[...], preferred_element_type=jnp.float32)
    out = acc * s_ref[...] + b_ref[...]
    if relu:
        out = jnp.maximum(out, 0.0)
    o_ref[...] = out.astype(o_ref.dtype)


def _conv3x3_bn_kernel(x_ref, w_ref, s_ref, b_ref, o_ref, *, rh, W, Wr):
    """3x3 conv (pad=1) + BN + ReLU for one row-chunk of one image.

    x_ref holds the whole zero-padded image flattened to ((H+3)*Wr, C) with a
    row stride Wr that is a multiple of 8, so the dy taps are sublane-aligned
    slices; dx taps are +-1/+-2 sublane offsets inside VMEM.  The 9 taps become
    9 accumulated MXU dots on a bounded (rh*Wr, Co) f32 accumulator and no
    shifted/im2col copies of the activation ever round-trip HBM."""
    co = o_ref.shape[-1]
    L = rh * Wr
    base = pl.multiple_of(pl.program_id(1) * L, 8)   # Wr % 8 == 0 -> aligned
    acc = jnp.zeros((L, co), jnp.float32)
    for dy in range(3):
        for dx in range(3):
            slab = x_ref[0, pl.ds(base + dy * Wr + dx, L), :]
            acc = acc + jnp.dot(slab, w_ref[dy, dx],
                                preferred_element_type=jnp.float32)
    out = jnp.maximum(acc * s_ref[...] + b_ref[...], 0.0)
    out = out.reshape(rh, Wr, co)[:, :W, :]          # drop right-pad columns
    o_ref[0, :, :, :] = out.astype(o_ref.dtype)


def _dual_matmul_residual_kernel(a_ref, wa_ref, sa_ref, ba_ref,
                                 b_ref, wb_ref, sb_ref, bb_ref, o_ref):
    """conv3+bn3 fused with downsample conv+bn, residual add and ReLU."""
    main = jnp.dot(a_ref[...], wa_ref[...],
                   preferred_element_type=jnp.float32) * sa_ref[...] + ba_ref[...]
    ident = jnp.dot(b_ref[...], wb_ref[...],
                    preferred_element_type=jnp.float32) * sb_ref[...] + bb_ref[...]
    o_ref[...] = jnp.maximum(main + ident, 0.0).astype(o_ref.dtype)


def _matmul_residual_kernel(a_ref, wa_ref, sa_ref, ba_ref, id_ref, o_ref):
    """conv3+bn3 + raw identity add + ReLU (no-downsample case)."""
    main = jnp.dot(a_ref[...], wa_ref[...],
                   preferred_element_type=jnp.float32) * sa_ref[...] + ba_ref[...]
    out = jnp.maximum(main + id_ref[...].astype(jnp.float32), 0.0)
    o_ref[...] = out.astype(o_ref.dtype)


# ---------------------------------------------------------------------------
# pallas_call wrappers
# ---------------------------------------------------------------------------
def fused_matmul_bn(x, w, scale, bias, *, relu, out_dtype=jnp.bfloat16):
    M, K = x.shape
    Nc = w.shape[1]
    tm, m_pad = _m_tiling(M)
    xp = _pad_rows(x, m_pad)
    out = pl.pallas_call(
        functools.partial(_matmul_bn_kernel, relu=relu),
        out_shape=jax.ShapeDtypeStruct((m_pad, Nc), out_dtype),
        grid=(m_pad // tm,),
        in_specs=[
            pl.BlockSpec((tm, K), lambda i: (i, 0)),
            pl.BlockSpec((K, Nc), lambda i: (0, 0)),
            pl.BlockSpec((1, Nc), lambda i: (0, 0)),
            pl.BlockSpec((1, Nc), lambda i: (0, 0)),
        ],
        out_specs=pl.BlockSpec((tm, Nc), lambda i: (i, 0)),
        compiler_params=_params(("parallel",)),
    )(xp, w, scale.reshape(1, Nc), bias.reshape(1, Nc))
    return out[:M]


def fused_conv3x3_bn(y_nhwc, w_kkio, scale, bias):
    """y:(N,H,W,C) bf16, w:(3,3,C,Co) bf16 -> (N,H,W,Co) bf16 (conv+BN+ReLU).

    Single zero-padded slab (pad=1 + right pad to a row stride Wr that is a
    multiple of 8, + one extra bottom row so all in-kernel slices stay in
    bounds).  Grid is (batch, row_chunks), both parallel; the image block's
    index is constant across the row-chunk axis so it is DMA'd once per image.
    """
    N, H, W, C = y_nhwc.shape
    Co = w_kkio.shape[-1]
    Wr = _round_up(W + 2, 8)
    rh = _row_chunk(H, Wr, N)
    n_rt = H // rh
    yp = jnp.pad(y_nhwc, ((0, 0), (1, 2), (1, Wr - W - 1), (0, 0)))  # (N,H+3,Wr,C)
    yp = yp.reshape(N, (H + 3) * Wr, C)
    return pl.pallas_call(
        functools.partial(_conv3x3_bn_kernel, rh=rh, W=W, Wr=Wr),
        out_shape=jax.ShapeDtypeStruct((N, H, W, Co), jnp.bfloat16),
        grid=(N, n_rt),
        in_specs=[
            pl.BlockSpec((1, (H + 3) * Wr, C), lambda n, r: (n, 0, 0)),
            pl.BlockSpec((3, 3, C, Co), lambda n, r: (0, 0, 0, 0)),
            pl.BlockSpec((1, Co), lambda n, r: (0, 0)),
            pl.BlockSpec((1, Co), lambda n, r: (0, 0)),
        ],
        out_specs=pl.BlockSpec((1, rh, W, Co), lambda n, r: (n, r, 0, 0)),
        compiler_params=_params(("parallel", "parallel")),
    )(yp, w_kkio, scale.reshape(1, Co), bias.reshape(1, Co))


def fused_dual_residual(a, wa, sa, ba, b, wb, sb, bb):
    M, Ka = a.shape
    Kb = b.shape[1]
    Nc = wa.shape[1]
    tm, m_pad = _m_tiling(M)
    ap = _pad_rows(a, m_pad)
    bp = _pad_rows(b, m_pad)
    out = pl.pallas_call(
        _dual_matmul_residual_kernel,
        out_shape=jax.ShapeDtypeStruct((m_pad, Nc), jnp.bfloat16),  # bf16 writeback
        grid=(m_pad // tm,),
        in_specs=[
            pl.BlockSpec((tm, Ka), lambda i: (i, 0)),
            pl.BlockSpec((Ka, Nc), lambda i: (0, 0)),
            pl.BlockSpec((1, Nc), lambda i: (0, 0)),
            pl.BlockSpec((1, Nc), lambda i: (0, 0)),
            pl.BlockSpec((tm, Kb), lambda i: (i, 0)),
            pl.BlockSpec((Kb, Nc), lambda i: (0, 0)),
            pl.BlockSpec((1, Nc), lambda i: (0, 0)),
            pl.BlockSpec((1, Nc), lambda i: (0, 0)),
        ],
        out_specs=pl.BlockSpec((tm, Nc), lambda i: (i, 0)),
        compiler_params=_params(("parallel",)),
    )(ap, wa, sa.reshape(1, Nc), ba.reshape(1, Nc),
      bp, wb, sb.reshape(1, Nc), bb.reshape(1, Nc))
    return out[:M]


def fused_residual_identity(a, wa, sa, ba, identity):
    M, Ka = a.shape
    Nc = wa.shape[1]
    tm, m_pad = _m_tiling(M)
    ap = _pad_rows(a, m_pad)
    ip = _pad_rows(identity, m_pad)
    out = pl.pallas_call(
        _matmul_residual_kernel,
        out_shape=jax.ShapeDtypeStruct((m_pad, Nc), jnp.bfloat16),  # bf16 writeback
        grid=(m_pad // tm,),
        in_specs=[
            pl.BlockSpec((tm, Ka), lambda i: (i, 0)),
            pl.BlockSpec((Ka, Nc), lambda i: (0, 0)),
            pl.BlockSpec((1, Nc), lambda i: (0, 0)),
            pl.BlockSpec((1, Nc), lambda i: (0, 0)),
            pl.BlockSpec((tm, Nc), lambda i: (i, 0)),
        ],
        out_specs=pl.BlockSpec((tm, Nc), lambda i: (i, 0)),
        compiler_params=_params(("parallel",)),
    )(ap, wa, sa.reshape(1, Nc), ba.reshape(1, Nc), ip)
    return out[:M]


# ---------------------------------------------------------------------------
# Plain-JAX glue (layout plumbing only)
# ---------------------------------------------------------------------------
def _fold_bn(gamma, beta, mean, var):
    scale = gamma / jnp.sqrt(var + EPS)
    bias = beta - mean * scale
    return scale.astype(jnp.float32), bias.astype(jnp.float32)


def _avgpool_nhwc(y, s):
    """(N,H,W,C) -> (N,H//s,W//s,C); kernel = stride = s (bf16 in/out)."""
    N, H, W, C = y.shape
    Ho, Wo = H // s, W // s
    pooled = y.reshape(N, Ho, s, Wo, s, C).astype(jnp.float32).mean(axis=(2, 4))
    return pooled.astype(y.dtype)


# ---------------------------------------------------------------------------
# Bottleneck forward (Pallas)
# ---------------------------------------------------------------------------
def bottleneck_forward(x_nchw, params, inplanes, planes, stride):
    N, Cin, H, W = x_nchw.shape
    P = planes
    outC = P * EXPANSION
    s = stride

    cin_p = max(LANE, _round_up(Cin, LANE))
    p_p = max(LANE, _round_up(P, LANE))
    outc_p = max(LANE, _round_up(outC, LANE))

    # NCHW -> NHWC, lane-pad channels, bf16 MXU operands.
    # TODO(synk): in a full ResNet stack, keep activations NHWC/bf16 between
    #             blocks to avoid these per-block layout round trips.
    x = jnp.transpose(x_nchw, (0, 2, 3, 1)).astype(jnp.float32)
    x = _pad_channels(x, cin_p).astype(jnp.bfloat16)                 # (N,H,W,cin_p)

    # ---- conv1 (1x1) + bn1 + relu -------------------------------------------
    w1 = params["conv1_w"].reshape(P, Cin).T                         # (Cin, P)
    w1 = jnp.pad(w1, ((0, cin_p - Cin), (0, p_p - P))).astype(jnp.bfloat16)
    s1, b1 = _fold_bn(*params["bn1"])
    s1, b1 = _pad_channels(s1, p_p), _pad_channels(b1, p_p)
    y1 = fused_matmul_bn(x.reshape(N * H * W, cin_p), w1, s1, b1, relu=True)
    y1 = y1.reshape(N, H, W, p_p)

    # ---- conv2 (3x3, pad=1) + bn2 + relu --------------------------------------
    w2 = jnp.transpose(params["conv2_w"], (2, 3, 1, 0))              # (3,3,in,out)
    w2 = jnp.pad(w2, ((0, 0), (0, 0), (0, p_p - P), (0, p_p - P))).astype(jnp.bfloat16)
    s2, b2 = _fold_bn(*params["bn2"])
    s2, b2 = _pad_channels(s2, p_p), _pad_channels(b2, p_p)
    y2 = fused_conv3x3_bn(y1, w2, s2, b2)                            # (N,H,W,p_p)

    # ---- avgpool(stride) + conv3 (1x1) + bn3 + residual + relu ----------------
    w3 = params["conv3_w"].reshape(outC, P).T                        # (P, outC)
    w3 = jnp.pad(w3, ((0, p_p - P), (0, outc_p - outC))).astype(jnp.bfloat16)
    s3, b3 = _fold_bn(*params["bn3"])
    s3, b3 = _pad_channels(s3, outc_p), _pad_channels(b3, outc_p)

    if s > 1:
        a = _avgpool_nhwc(y2, s)
        Ho, Wo = H // s, W // s
    else:
        a = y2
        Ho, Wo = H, W
    a = a.reshape(N * Ho * Wo, p_p)

    has_downsample = (s > 1) or (inplanes != outC)
    if has_downsample:
        wd = params["ds_conv_w"].reshape(outC, Cin).T                # (Cin, outC)
        wd = jnp.pad(wd, ((0, cin_p - Cin), (0, outc_p - outC))).astype(jnp.bfloat16)
        sd, bd = _fold_bn(*params["ds_bn"])
        sd, bd = _pad_channels(sd, outc_p), _pad_channels(bd, outc_p)
        ident = _avgpool_nhwc(x, s) if s > 1 else x
        ident = ident.reshape(N * Ho * Wo, cin_p)
        out = fused_dual_residual(a, w3, s3, b3, ident, wd, sd, bd)
    else:
        # inplanes == outC and stride == 1: identity is x itself (cin_p == outc_p).
        ident = x.reshape(N * H * W, cin_p)
        out = fused_residual_identity(a, w3, s3, b3, ident)

    out = out[:, :outC].reshape(N, Ho, Wo, outC)
    return jnp.transpose(out, (0, 3, 1, 2)).astype(jnp.float32)      # back to NCHW


# ---------------------------------------------------------------------------
# Pure-JAX reference (for correctness check)
# ---------------------------------------------------------------------------
def bottleneck_reference(x, params, inplanes, planes, stride):
    def conv(y, w, pad):
        return lax.conv_general_dilated(
            y, w, window_strides=(1, 1), padding=pad,
            dimension_numbers=("NCHW", "OIHW", "NCHW"))

    def bn(y, bnp):
        gamma, beta, mean, var = bnp
        sc = gamma / jnp.sqrt(var + EPS)
        bi = beta - mean * sc
        return y * sc[None, :, None, None] + bi[None, :, None, None]

    def avgpool(y, s_):
        n, c, h, w = y.shape
        return y.reshape(n, c, h // s_, s_, w // s_, s_).mean(axis=(3, 5))

    relu = lambda y: jnp.maximum(y, 0.0)
    out = relu(bn(conv(x, params["conv1_w"], ((0, 0), (0, 0))), params["bn1"]))
    out = relu(bn(conv(out, params["conv2_w"], ((1, 1), (1, 1))), params["bn2"]))
    if stride > 1:
        out = avgpool(out, stride)
    out = bn(conv(out, params["conv3_w"], ((0, 0), (0, 0))), params["bn3"])
    if stride > 1 or inplanes != planes * EXPANSION:
        ident = x
        if stride > 1:
            ident = avgpool(ident, stride)
        ident = bn(conv(ident, params["ds_conv_w"], ((0, 0), (0, 0))), params["ds_bn"])
    else:
        ident = x
    return relu(out + ident)


# ---------------------------------------------------------------------------
# Deterministic parameter init (shapes follow Bottleneck.__init__)
# ---------------------------------------------------------------------------
def init_params(key, inplanes, planes, stride):
    outC = planes * EXPANSION
    ks = iter(jax.random.split(key, 32))

    def bn_params(c):
        return (jax.random.uniform(next(ks), (c,), minval=0.5, maxval=1.5),  # gamma
                jax.random.normal(next(ks), (c,)) * 0.1,                     # beta
                jax.random.normal(next(ks), (c,)) * 0.1,                     # running_mean
                jax.random.uniform(next(ks), (c,), minval=0.5, maxval=1.5))  # running_var

    params = {
        "conv1_w": jax.random.normal(next(ks), (planes, inplanes, 1, 1)) * 0.1,
        "bn1": bn_params(planes),
        "conv2_w": jax.random.normal(next(ks), (planes, planes, 3, 3)) * 0.1,
        "bn2": bn_params(planes),
        "conv3_w": jax.random.normal(next(ks), (outC, planes, 1, 1)) * 0.1,
        "bn3": bn_params(outC),
    }
    if stride > 1 or inplanes != outC:
        params["ds_conv_w"] = jax.random.normal(next(ks), (outC, inplanes, 1, 1)) * 0.1
        params["ds_bn"] = bn_params(outC)
    return params


# ---------------------------------------------------------------------------
if __name__ == "__main__":
    inplanes, planes, stride = 16, 8, 2
    N, H, W = 2, 16, 16

    key = jax.random.PRNGKey(0)
    kx, kp = jax.random.split(key)
    x = jax.random.normal(kx, (N, inplanes, H, W), dtype=jnp.float32)  # NCHW like torch
    params = init_params(kp, inplanes, planes, stride)

    out = jax.block_until_ready(
        bottleneck_forward(x, params, inplanes, planes, stride))
    ref = jax.block_until_ready(
        bottleneck_reference(x, params, inplanes, planes, stride))

    assert out.shape == (N, planes * EXPANSION, H // stride, W // stride), out.shape
    # bf16 MXU operands and bf16 activation/result writeback (f32 accumulate)
    # introduce ~1e-2-scale drift vs the pure-f32 reference.
    assert jnp.allclose(out, ref, atol=1e-1, rtol=1e-1), \
        float(jnp.max(jnp.abs(out - ref)))

    print("KERNEL_OK")
</pallas_src>

<mosaic_0001>
module attributes {stable_mosaic.version = 11 : i64} {
  func.func @_matmul_bn_kernel(%arg0: i32, %arg1: memref<256x128xbf16, #tpu.memory_space<vmem>>, %arg2: memref<128x128xbf16, #tpu.memory_space<vmem>>, %arg3: memref<1x128xf32, #tpu.memory_space<vmem>>, %arg4: memref<1x128xf32, #tpu.memory_space<vmem>>, %arg5: memref<256x128xbf16, #tpu.memory_space<vmem>>) attributes {dimension_semantics = [#tpu.dimension_semantics<parallel>], iteration_bounds = array<i64: 2>, scalar_prefetch = 0 : i64, scratch_operands = 0 : i64, tpu.core_type = #tpu.core_type<tc>, window_params = [{transform_indices = @transform_0, window_bounds = array<i64: 256, 128>}, {pipeline_mode = #tpu.pipeline_mode<synchronous>, transform_indices = @transform_1, window_bounds = array<i64: 128, 128>}, {pipeline_mode = #tpu.pipeline_mode<synchronous>, transform_indices = @transform_2, window_bounds = array<i64: 1, 128>}, {pipeline_mode = #tpu.pipeline_mode<synchronous>, transform_indices = @transform_3, window_bounds = array<i64: 1, 128>}, {transform_indices = @transform_4, window_bounds = array<i64: 256, 128>}]} {
    %c0 = arith.constant 0 : index
    %c0_0 = arith.constant 0 : index
    %0 = vector.load %arg1[%c0, %c0_0] : memref<256x128xbf16, #tpu.memory_space<vmem>>, vector<256x128xbf16>
    %c0_1 = arith.constant 0 : index
    %c0_2 = arith.constant 0 : index
    %1 = vector.load %arg2[%c0_1, %c0_2] : memref<128x128xbf16, #tpu.memory_space<vmem>>, vector<128x128xbf16>
    %cst = arith.constant dense<0.000000e+00> : vector<256x128xf32>
    %2 = tpu.matmul %0, %1, %cst {dimension_numbers = #tpu.dot_dimension_numbers<[1], [0], [0], [1], [0, 0, 1, 1], [], []>} : vector<256x128xbf16>, vector<128x128xbf16>, vector<256x128xf32> -> vector<256x128xf32>
    %c0_3 = arith.constant 0 : index
    %c0_4 = arith.constant 0 : index
    %3 = vector.load %arg3[%c0_3, %c0_4] : memref<1x128xf32, #tpu.memory_space<vmem>>, vector<1x128xf32>
    %4 = vector.broadcast %3 : vector<1x128xf32> to vector<256x128xf32>
    %5 = arith.mulf %2, %4 : vector<256x128xf32>
    %c0_5 = arith.constant 0 : index
    %c0_6 = arith.constant 0 : index
    %6 = vector.load %arg4[%c0_5, %c0_6] : memref<1x128xf32, #tpu.memory_space<vmem>>, vector<1x128xf32>
    %7 = vector.broadcast %6 : vector<1x128xf32> to vector<256x128xf32>
    %8 = arith.addf %5, %7 : vector<256x128xf32>
    %cst_7 = arith.constant 0.000000e+00 : f32
    %9 = vector.broadcast %cst_7 : f32 to vector<256x128xf32>
    %10 = arith.maximumf %8, %9 : vector<256x128xf32>
    %11 = arith.truncf %10 : vector<256x128xf32> to vector<256x128xbf16>
    %c0_8 = arith.constant 0 : index
    %c0_9 = arith.constant 0 : index
    %12 = vector.load %arg5[%c0_8, %c0_9] : memref<256x128xbf16, #tpu.memory_space<vmem>>, vector<256x128xbf16>
    tpu.vector_store %arg5[%c0_8, %c0_9], %11 {strides = array<i32>} : memref<256x128xbf16, #tpu.memory_space<vmem>>, vector<256x128xbf16>,
    return
  }
  func.func @transform_0(%arg0: i32) -> (i32, i32) {
    %c0_i32 = arith.constant 0 : i32
    %c0_i32_0 = arith.constant 0 : i32
    return %arg0, %c0_i32 : i32, i32
  }
  func.func @transform_1(%arg0: i32) -> (i32, i32) {
    %c0_i32 = arith.constant 0 : i32
    %c0_i32_0 = arith.constant 0 : i32
    %c0_i32_1 = arith.constant 0 : i32
    return %c0_i32, %c0_i32_0 : i32, i32
  }
  func.func @transform_2(%arg0: i32) -> (i32, i32) {
    %c0_i32 = arith.constant 0 : i32
    %c0_i32_0 = arith.constant 0 : i32
    %c0_i32_1 = arith.constant 0 : i32
    return %c0_i32, %c0_i32_0 : i32, i32
  }
  func.func @transform_3(%arg0: i32) -> (i32, i32) {
    %c0_i32 = arith.constant 0 : i32
    %c0_i32_0 = arith.constant 0 : i32
    %c0_i32_1 = arith.constant 0 : i32
    return %c0_i32, %c0_i32_0 : i32, i32
  }
  func.func @transform_4(%arg0: i32) -> (i32, i32) {
    %c0_i32 = arith.constant 0 : i32
    %c0_i32_0 = arith.constant 0 : i32
    return %arg0, %c0_i32 : i32, i32
  }
}

</mosaic_0001>

<bundles_post_ra>
// kernel: tpu_custom_call.1
= control target key start
LH: loop header
LB: loop body
LE: loop exit
PB: predicated region body
PF: predicated region fallthrough
CT: control target
= control target key end

     0   :  { %9 = vsyncpa [#allocation3], 0  ;;  %s1526_s0 = inlined_call_operand.hbm [shape: bf16[512,128], index: 0, kind: input, shape index: {}]   ;;  %s1527_s1 = inlined_call_operand.hbm [shape: bf16[128,128], index: 1, kind: input, shape index: {}]   ;;  %s1528_s2 = inlined_call_operand.vmem [shape: f32[1,128], index: 2, kind: input, shape index: {}]   ;;  %s1529_s3 = inlined_call_operand.vmem [shape: f32[1,128], index: 3, kind: input, shape index: {}]   ;;  %s1530_s4 = inlined_call_operand.hbm [shape: bf16[512,128], index: 4, kind: output, shape index: {}]  }
   0x1   :  { %11 = vsyncpa [#allocation3 + $0x1], 0 }
   0x2   :  { %12 = vsyncpa [#allocation6], 0 }
   0x3   :  { %13 = vsyncpa [#allocation4], 0 }
   0x4   :  { %15 = vsyncpa [#allocation4 + $0x1], 0  ;;  %s1267_s15 = smov 0   ;;  %s1269_s16 = smov 0  }
   0x5   :  { %s1271_s17 = smov 0   ;;  %s1273_s18 = smov 0  }
   0x6 LB: > { %s1288_s19 = sadd.s32 4294967295, %s1235_s18   ;;  %s785_s20 = sadd.s32 4294967294, %s1235_s18   ;;  %s1235_s18 = sphi %s1273_s18, %s1540_s18   ;;  %s1231_s17 = sphi %s1271_s17, %s1539_s17   ;;  %s1227_s16 = sphi %s1269_s16, %s1538_s16   ;;  %s1223_s15 = sphi %s1267_s15, %s1537_s15  }
   0x7   : > { %p41_p0 = scmp.ne.s32.totalorder %s1227_s16, %s1223_s15  ;;  %p42_p1 = scmp.eq.s32.totalorder %s1288_s19, 0 }
   0x8   : > { %p128_p2 = scmp.eq.s32.totalorder %s1288_s19, 1  ;;  %p134_p3 = scmp.eq.s32.totalorder %s785_s20, 1 }
   0x9   : > { %p1297_p4 = por %p42_p1, %p41_p0  ;;  %p786_p5 = scmp.ge.s32.totalorder %s1235_s18, 1 }
   0xa   : > { %p1302_p6 = por %p134_p3, %p41_p0  ;;  %p141_p7 = scmp.lt.s32.totalorder %s1235_s18, 3 }
   0xb   : > { %s152_s25 = sshll.u32 %s1527_s1, 4  ;;  %s1237_s27 = smov [#allocation5]   ;;  %s153_s25 = int_to_ptr.hbm [resolvable:$true] %s152_s25 }
   0xc   : > { %p1310_p8 = pnand %p786_p5, %p141_p7  ;;  %s154_s28 = sshll.u32 %s1237_s27, 4  ;;  %s155_s28 = int_to_ptr.vmem [resolvable:$true] %s154_s28 }
   0xd   : > { %s1320_s29 = sadd.s32 1, %s1235_s18   ;;  %s1238_s30 = smov 64  }
   0xe   : > { %p1050_p9 = pneg %p1310_p8  ;;  %s1239_s5 = smov 4  }
   0xf   : > { %s25_s6 = ssub.s32 %s1235_s18, %s1320_s29  ;;  %s28_s7 = sadd.s32 1, %s1231_s17 }
  0x10   : > { %p1051_p10 = pnand %p1050_p9, %p42_p1  ;;  %p26_p12 = scmp.eq.s32.totalorder %s25_s6, 0 }
  0x11   : > { %p35_p13 = scmp.ne.s32.totalorder %s1231_s17, %s1227_s16  ;;  %p36_p0 = scmp.eq.s32.totalorder %s1235_s18, 0 }
  0x12   : > { %1053 = dma.hbm_to_vmem [thread:$0]  (!%p1051_p10), %s153_s25, 1024, %s155_s28, [#allocation6], %s1238_s30, %s1238_s30, %s1239_s5  }
  0x13   : > { %s1332_s8 = scalar_select %p26_p12, %s1231_s17, %s28_s7  }
  0x14   : > { %p1336_p3 = por %p128_p2, %p35_p13  ;;  %p1063_p5 = scmp.lt.s32.totalorder %s1235_s18, 2 }
  0x15   : > { %s174_s10 = sand.u32 1, %s1231_s17   ;;  %s897_s11 = sshll.u32 %s1235_s18, 7 }
  0x16   : > { %p37_p7 = por %p36_p0, %p35_p13  ;;  %s789_s12 = sshll.u32 %s174_s10, 7 }
  0x17   : > { %s183_s20 = scalar_lea.hbm %s1526_s0, %s897_s11  ;;  %s178_s24 = scalar_lea.vmem [#allocation2], %s789_s12 }
  0x18   : > { %s184_s23 = sshll.u32 %s183_s20, 4  ;;  %s186_s25 = sshll.u32 %s178_s24, 4  ;;  %s185_s23 = int_to_ptr.hbm [resolvable:$true] %s184_s23  ;;  %s187_s25 = int_to_ptr.vmem [resolvable:$true] %s186_s25 }
  0x19   : > { %p1346_p9 = pnand %p1063_p5, %p37_p7  ;;  %s175_s28 = scalar_lea.sflag [#allocation3], %s174_s10 }
  0x1a   : > { %s1135_s6 = sshra.s32 %s185_s23, 4  ;;  %s1142_s12 = scalar_lea.hbm %s1526_s0, 256  ;;  %s1136_s6 = int_to_ptr.hbm [resolvable:$true] %s1135_s6 }
  0x1b   : > { %s1137_s7 = scalar_lea.hbm %s1136_s6, 128  ;;  %p1139_p10 = pneg %p1346_p9 }
  0x1c   : > { %p1138_p2 = scmp.ne.s32.totalorder %s1136_s6, %s1137_s7  ;;  %p1143_p0 = scmp.lt.s32.totalorder %s1136_s6, %s1526_s0 }
  0x1d   : > { %p1144_p5 = scmp.lt.s32.totalorder %s1142_s12, %s1137_s7 }
  0x1e   : > { %p1140_p12 = pnand %p1139_p10, %p1138_p2 }
  0x1f   : > { %p1145_p7 = por %p1144_p5, %p1143_p0 }
  0x20   : > { %p1141_p13 = pneg %p1140_p12 }
  0x22   : > { %p1146_p11 = pnand %p1145_p7, %p1141_p13 }
  0x24   : > { %1149 = shalt.err (!%p1146_p11)
}
  0x25   : > { %1057 = dma.hbm_to_vmem [thread:$0]  (!%p1346_p9), %s185_s23, 2048, %s187_s25, %s175_s28, %s1238_s30, %s1238_s30, %s1239_s5  }
  0x26   : > { %198 = sbr.rel (%p1310_p8) target bundleno = 280 (0x118), region = 36  ;;  %s1366_s10 = sand.u32 (!%p1310_p8), 1, %s1227_s16  }
  0x27   : > { %s793_s24 = sshll.u32 (!%p1310_p8), %s1366_s10, 7  ;;  %s201_s6 = scalar_lea.sflag (!%p1310_p8), [#allocation3], %s1366_s10 }
  0x28   : > { %s1372_s7 = scalar_lea.vmem (!%p1310_p8), [#allocation2], %s793_s24 }
  0x2b   : > { %1210 = dma.done.wait (%p1297_p4), %s201_s6, 2048  }
  0x2c   : > { %1212 = vsyncadd (%p1297_p4), %s201_s6, 4294965248 }
  0x2d   : > { %1214 = dma.done.wait (%p42_p1), [#allocation6], 1024  }
  0x2e   : > { %1216 = vsyncadd (%p42_p1), [#allocation6], 4294966272  ;;  %v921_v0 = vld [vmem:[#allocation5 + $0x38] sm:$0xff]  ;;  %v920_v1 = vld [vmem:[#allocation5 + $0x30] sm:$0xff]  ;;  %s1424_s23 = scalar_lea.vmem [#allocation7], %s793_s24  ;;  %s922_s25 = sshll.u32 %s1288_s19, 7 }
  0x2f   : > { %429 = vmatpush.bf16.msra.mxu0 %v921_v0  ;;  %1018 = vmatpush.bf16.msra.mxu1 %v921_v0  ;;  %v919_v2 = vld [vmem:[#allocation5 + $0x28] sm:$0xff]  ;;  %v918_v3 = vld [vmem:[#allocation5 + $0x20] sm:$0xff]  ;;  %v917_v4 = vld [vmem:[#allocation5 + $0x18] sm:$0xff]  ;;  %s698_s11 = scalar_lea.hbm %s1530_s4, %s922_s25  ;;  %s699_s19 = sshll.u32 %s1424_s23, 4  ;;  %s700_s19 = int_to_ptr.vmem [resolvable:$true] %s699_s19 }
  0x30   : > { %1019 = vmatpush.bf16.msra.mxu2 %v921_v0  ;;  %1020 = vmatpush.bf16.msra.mxu3 %v921_v0  ;;  %v916_v5 = vld [vmem:[#allocation5 + $0x10] sm:$0xff]  ;;  %v915_v6 = vld [vmem:[#allocation5 + $0x8] sm:$0xff]  ;;  %v914_v7 = vld [vmem:[#allocation5] sm:$0xff]  ;;  %s701_s13 = sshll.u32 %s698_s11, 4  ;;  %s687_s12 = scalar_lea.sflag [#allocation4], %s1366_s10  ;;  %s702_s13 = int_to_ptr.hbm [resolvable:$true] %s701_s13 }
  0x31   : > { %v898_v8 = vld [vmem:[%s1372_s7] sm:$0xff]  ;;  %v899_v12 = vld [vmem:[%s1372_s7 + $0x8] sm:$0xff]  ;;  %v900_v16 = vld [vmem:[%s1372_s7 + $0x10] sm:$0xff]  ;;  %s1179_s14 = sshra.s32 %s702_s13, 4  ;;  %s1180_s14 = int_to_ptr.hbm [resolvable:$true] %s1179_s14 }
  0x32   : > { %v902_v9 = vld [vmem:[%s1372_s7 + $0x20] sm:$0xff]  ;;  %v903_v13 = vld [vmem:[%s1372_s7 + $0x28] sm:$0xff]  ;;  %v904_v17 = vld [vmem:[%s1372_s7 + $0x30] sm:$0xff]  ;;  %s1181_s20 = scalar_lea.hbm %s1180_s14, 128  ;;  %p1186_p11 = scmp.lt.s32.totalorder %s1180_s14, %s1530_s4 }
  0x33   : > { %430 = vmatpush.bf16.msra.mxu0 %v920_v1  ;;  %1021 = vmatpush.bf16.msra.mxu1 %v920_v1  ;;  %v906_v10 = vld [vmem:[%s1372_s7 + $0x40] sm:$0xff]  ;;  %v907_v14 = vld [vmem:[%s1372_s7 + $0x48] sm:$0xff]  ;;  %v908_v18 = vld [vmem:[%s1372_s7 + $0x50] sm:$0xff]  ;;  %p1182_p1 = scmp.ne.s32.totalorder %s1180_s14, %s1181_s20 }
  0x34   : > { %1022 = vmatpush.bf16.msra.mxu2 %v920_v1  ;;  %1023 = vmatpush.bf16.msra.mxu3 %v920_v1  ;;  %v910_v11 = vld [vmem:[%s1372_s7 + $0x60] sm:$0xff]  ;;  %v911_v15 = vld [vmem:[%s1372_s7 + $0x68] sm:$0xff]  ;;  %v912_v19 = vld [vmem:[%s1372_s7 + $0x70] sm:$0xff] }
  0x35   : > { %v901_v20 = vld [vmem:[%s1372_s7 + $0x18] sm:$0xff]  ;;  %v1401_v26 = vld [vmem:[%s1528_s2] ss:$0 sm:$0xff]  ;;  %p1183_p4 = pnand %p1182_p1, %p1336_p3 }
  0x36   : > { %v905_v21 = vld [vmem:[%s1372_s7 + $0x38] sm:$0xff]  ;;  %v1407_v28 = vld [vmem:[%s1529_s3] ss:$0 sm:$0xff] }
  0x37   : > { %431 = vmatpush.bf16.msra.mxu0 %v919_v2  ;;  %1024 = vmatpush.bf16.msra.mxu1 %v919_v2  ;;  %v909_v22 = vld [vmem:[%s1372_s7 + $0x58] sm:$0xff]  ;;  %p1184_p8 = pneg %p1183_p4 }
  0x38   : > { %1025 = vmatpush.bf16.msra.mxu2 %v919_v2  ;;  %1026 = vmatpush.bf16.msra.mxu3 %v919_v2  ;;  %v913_v23 = vld [vmem:[%s1372_s7 + $0x78] sm:$0xff]  ;;  %s1185_s7 = scalar_lea.hbm %s1530_s4, 256 }
  0x39   : > { %p1187_p9 = scmp.lt.s32.totalorder %s1185_s7, %s1181_s20 }
  0x3b   : > { %432 = vmatpush.bf16.msra.mxu0 %v918_v3  ;;  %1027 = vmatpush.bf16.msra.mxu1 %v918_v3  ;;  %p1188_p2 = por %p1187_p9, %p1186_p11 }
  0x3c   : > { %1028 = vmatpush.bf16.msra.mxu2 %v918_v3  ;;  %1029 = vmatpush.bf16.msra.mxu3 %v918_v3 }
  0x3d   : > { %p1189_p10 = pnand %p1188_p2, %p1184_p8 }
  0x3f   : > { %433 = vmatpush.bf16.msra.mxu0 %v917_v4  ;;  %1030 = vmatpush.bf16.msra.mxu1 %v917_v4 }
  0x40   : > { %1031 = vmatpush.bf16.msra.mxu2 %v917_v4  ;;  %1032 = vmatpush.bf16.msra.mxu3 %v917_v4 }
  0x43   : > { %434 = vmatpush.bf16.msra.mxu0 %v916_v5  ;;  %1033 = vmatpush.bf16.msra.mxu1 %v916_v5 }
  0x44   : > { %1034 = vmatpush.bf16.msra.mxu2 %v916_v5  ;;  %1035 = vmatpush.bf16.msra.mxu3 %v916_v5 }
  0x47   : > { %435 = vmatpush.bf16.msra.mxu0 %v915_v6  ;;  %1036 = vmatpush.bf16.msra.mxu1 %v915_v6 }
  0x48   : > { %1037 = vmatpush.bf16.msra.mxu2 %v915_v6  ;;  %1038 = vmatpush.bf16.msra.mxu3 %v915_v6 }
  0x4b   : > { %436 = vmatpush.bf16.msra.mxu0 %v914_v7  ;;  %1039 = vmatpush.bf16.msra.mxu1 %v914_v7 }
  0x4c   : > { %1040 = vmatpush.bf16.msra.mxu2 %v914_v7  ;;  %1041 = vmatpush.bf16.msra.mxu3 %v914_v7 }
  0x4e   : > { %437 = vmatmul.bf16.vlgmr.msra.gmra.mxu0 %v898_v8  ;;  %457 = vmatmul.bf16.vlgmr.msra.gmra.mxu1 %v902_v9 }
  0x4f   : > { %477 = vmatmul.bf16.vlgmr.msra.gmra.mxu2 %v906_v10  ;;  %497 = vmatmul.bf16.vlgmr.msra.gmra.mxu3 %v910_v11 }
  0x5e   : > { %442 = vmatmul.bf16.gmra.mxu0 %v899_v12  ;;  %462 = vmatmul.bf16.gmra.mxu1 %v903_v13 }
  0x5f   : > { %482 = vmatmul.bf16.gmra.mxu2 %v907_v14  ;;  %502 = vmatmul.bf16.gmra.mxu3 %v911_v15 }
  0x6e   : > { %447 = vmatmul.bf16.gmra.mxu0 %v900_v16  ;;  %467 = vmatmul.bf16.gmra.mxu1 %v904_v17 }
  0x6f   : > { %487 = vmatmul.bf16.gmra.mxu2 %v908_v18  ;;  %507 = vmatmul.bf16.gmra.mxu3 %v912_v19 }
  0x7e   : > { %452 = vmatmul.bf16.gmra.mxu0 %v901_v20  ;;  %472 = vmatmul.bf16.gmra.mxu1 %v905_v21 }
  0x7f   : > { %492 = vmatmul.bf16.gmra.mxu2 %v909_v22  ;;  %512 = vmatmul.bf16.gmra.mxu3 %v913_v23 }
  0xcb   : > { %v438_v24 = vpop.f32.mrf.mxu0  ;;  %v458_v25 = vpop.f32.mrf.mxu1 }
  0xcc   : > { %v522_v27 = vmul.f32 %v1401_v26, %v438_v24  ;;  %v530_v29 = vmul.f32 %v1401_v26, %v458_v25 }
  0xce   : > { %v558_v34 = vadd.f32 %v1407_v28, %v522_v27  ;;  %v566_v35 = vadd.f32 %v1407_v28, %v530_v29 }
  0xd0   : > { %v590_v42 = vmax.f32 %v558_v34, 0.0  ;;  %v598_v43 = vmax.f32 %v566_v35, 0.0 }
  0xd2   : > { %v478_v30 = vpop.f32.mrf.mxu2  ;;  %v498_v31 = vpop.f32.mrf.mxu3 }
  0xd3   : > { %v440_v32 = vpop.f32.mrf.mxu0  ;;  %v460_v33 = vpop.f32.mrf.mxu1  ;;  %v538_v40 = vmul.f32 %v1401_v26, %v478_v30  ;;  %v546_v41 = vmul.f32 %v1401_v26, %v498_v31 }
  0xd4   : > { %v523_v36 = vmul.f32 %v1401_v26, %v440_v32  ;;  %v531_v37 = vmul.f32 %v1401_v26, %v460_v33 }
  0xd5   : > { %v574_v50 = vadd.f32 %v1407_v28, %v538_v40  ;;  %v582_v51 = vadd.f32 %v1407_v28, %v546_v41 }
  0xd6   : > { %v559_v38 = vadd.f32 %v1407_v28, %v523_v36  ;;  %v567_v39 = vadd.f32 %v1407_v28, %v531_v37 }
  0xd7   : > { %v606_v58 = vmax.f32 %v574_v50, 0.0  ;;  %v614_v59 = vmax.f32 %v582_v51, 0.0 }
  0xd8   : > { %v591_v44 = vmax.f32 %v559_v38, 0.0  ;;  %v599_v45 = vmax.f32 %v567_v39, 0.0 }
  0xda   : > { %v926_v46 = vpack.c.bf16 %v591_v44, %v590_v42  ;;  %v946_v47 = vpack.c.bf16 %v599_v45, %v598_v43  ;;  %v480_v48 = vpop.f32.mrf.mxu2  ;;  %v500_v49 = vpop.f32.mrf.mxu3 }
  0xdb   : > { %v539_v52 = vmul.f32 %v1401_v26, %v480_v48  ;;  %v547_v53 = vmul.f32 %v1401_v26, %v500_v49  ;;  %v443_v54 = vpop.f32.mrf.mxu0  ;;  %v463_v55 = vpop.f32.mrf.mxu1 }
  0xdc   : > { %927 = vst [vmem:[%s1424_s23] sm:$0xff] %v926_v46   ;;  %v524_v62 = vmul.f32 %v1401_v26, %v443_v54  ;;  %v532_v63 = vmul.f32 %v1401_v26, %v463_v55 }
  0xdd   : > { %1006 = vst [vmem:[%s1424_s23 + $0x20] sm:$0xff] %v946_v47   ;;  %v575_v56 = vadd.f32 %v1407_v28, %v539_v52  ;;  %v583_v57 = vadd.f32 %v1407_v28, %v547_v53 }
  0xde   : > { %v560_v6 = vadd.f32 %v1407_v28, %v524_v62  ;;  %v568_v7 = vadd.f32 %v1407_v28, %v532_v63 }
  0xdf   : > { %v607_v60 = vmax.f32 %v575_v56, 0.0  ;;  %v615_v61 = vmax.f32 %v583_v57, 0.0 }
  0xe0   : > { %v592_v14 = vmax.f32 %v560_v6, 0.0  ;;  %v600_v15 = vmax.f32 %v568_v7, 0.0 }
  0xe1   : > { %v966_v0 = vpack.c.bf16 %v607_v60, %v606_v58  ;;  %v986_v1 = vpack.c.bf16 %v615_v61, %v614_v59 }
  0xe2   : > { %v483_v2 = vpop.f32.mrf.mxu2  ;;  %v503_v3 = vpop.f32.mrf.mxu3 }
  0xe3   : > { %1010 = vst [vmem:[%s1424_s23 + $0x40] sm:$0xff] %v966_v0   ;;  %v445_v4 = vpop.f32.mrf.mxu0  ;;  %v465_v5 = vpop.f32.mrf.mxu1  ;;  %v540_v12 = vmul.f32 %v1401_v26, %v483_v2  ;;  %v548_v13 = vmul.f32 %v1401_v26, %v503_v3 }
  0xe4   : > { %1014 = vst [vmem:[%s1424_s23 + $0x60] sm:$0xff] %v986_v1   ;;  %v525_v8 = vmul.f32 %v1401_v26, %v445_v4  ;;  %v533_v9 = vmul.f32 %v1401_v26, %v465_v5 }
  0xe5   : > { %v576_v22 = vadd.f32 %v1407_v28, %v540_v12  ;;  %v584_v23 = vadd.f32 %v1407_v28, %v548_v13 }
  0xe6   : > { %v561_v10 = vadd.f32 %v1407_v28, %v525_v8  ;;  %v569_v11 = vadd.f32 %v1407_v28, %v533_v9 }
  0xe7   : > { %v608_v32 = vmax.f32 %v576_v22, 0.0  ;;  %v616_v33 = vmax.f32 %v584_v23, 0.0 }
  0xe8   : > { %v593_v16 = vmax.f32 %v561_v10, 0.0  ;;  %v601_v17 = vmax.f32 %v569_v11, 0.0 }
  0xea   : > { %v931_v18 = vpack.c.bf16 %v593_v16, %v592_v14  ;;  %v951_v19 = vpack.c.bf16 %v601_v17, %v600_v15  ;;  %v485_v20 = vpop.f32.mrf.mxu2  ;;  %v505_v21 = vpop.f32.mrf.mxu3 }
  0xeb   : > { %v541_v24 = vmul.f32 %v1401_v26, %v485_v20  ;;  %v549_v25 = vmul.f32 %v1401_v26, %v505_v21  ;;  %v448_v27 = vpop.f32.mrf.mxu0  ;;  %v468_v29 = vpop.f32.mrf.mxu1 }
  0xec   : > { %1003 = vst [vmem:[%s1424_s23 + $0x8] sm:$0xff] %v931_v18   ;;  %v526_v36 = vmul.f32 %v1401_v26, %v448_v27  ;;  %v534_v37 = vmul.f32 %v1401_v26, %v468_v29 }
  0xed   : > { %1007 = vst [vmem:[%s1424_s23 + $0x28] sm:$0xff] %v951_v19   ;;  %v577_v30 = vadd.f32 %v1407_v28, %v541_v24  ;;  %v585_v31 = vadd.f32 %v1407_v28, %v549_v25 }
  0xee   : > { %v562_v44 = vadd.f32 %v1407_v28, %v526_v36  ;;  %v570_v45 = vadd.f32 %v1407_v28, %v534_v37 }
  0xef   : > { %v609_v34 = vmax.f32 %v577_v30, 0.0  ;;  %v617_v35 = vmax.f32 %v585_v31, 0.0 }
  0xf0   : > { %v594_v52 = vmax.f32 %v562_v44, 0.0  ;;  %v602_v53 = vmax.f32 %v570_v45, 0.0 }
  0xf1   : > { %v971_v38 = vpack.c.bf16 %v609_v34, %v608_v32  ;;  %v991_v39 = vpack.c.bf16 %v617_v35, %v616_v33 }
  0xf2   : > { %v488_v40 = vpop.f32.mrf.mxu2  ;;  %v508_v41 = vpop.f32.mrf.mxu3 }
  0xf3   : > { %1011 = vst [vmem:[%s1424_s23 + $0x48] sm:$0xff] %v971_v38   ;;  %v450_v42 = vpop.f32.mrf.mxu0  ;;  %v470_v43 = vpop.f32.mrf.mxu1  ;;  %v542_v50 = vmul.f32 %v1401_v26, %v488_v40  ;;  %v550_v51 = vmul.f32 %v1401_v26, %v508_v41 }
  0xf4   : > { %1015 = vst [vmem:[%s1424_s23 + $0x68] sm:$0xff] %v991_v39   ;;  %v527_v46 = vmul.f32 %v1401_v26, %v450_v42  ;;  %v535_v47 = vmul.f32 %v1401_v26, %v470_v43 }
  0xf5   : > { %v578_v60 = vadd.f32 %v1407_v28, %v542_v50  ;;  %v586_v61 = vadd.f32 %v1407_v28, %v550_v51 }
  0xf6   : > { %v563_v48 = vadd.f32 %v1407_v28, %v527_v46  ;;  %v571_v49 = vadd.f32 %v1407_v28, %v535_v47 }
  0xf7   : > { %v610_v4 = vmax.f32 %v578_v60, 0.0  ;;  %v618_v5 = vmax.f32 %v586_v61, 0.0 }
  0xf8   : > { %v595_v54 = vmax.f32 %v563_v48, 0.0  ;;  %v603_v55 = vmax.f32 %v571_v49, 0.0 }
  0xfa   : > { %v936_v56 = vpack.c.bf16 %v595_v54, %v594_v52  ;;  %v956_v57 = vpack.c.bf16 %v603_v55, %v602_v53  ;;  %v490_v58 = vpop.f32.mrf.mxu2  ;;  %v510_v59 = vpop.f32.mrf.mxu3 }
  0xfb   : > { %v543_v62 = vmul.f32 %v1401_v26, %v490_v58  ;;  %v551_v63 = vmul.f32 %v1401_v26, %v510_v59  ;;  %v453_v0 = vpop.f32.mrf.mxu0  ;;  %v473_v1 = vpop.f32.mrf.mxu1 }
  0xfc   : > { %1004 = vst [vmem:[%s1424_s23 + $0x10] sm:$0xff] %v936_v56   ;;  %v528_v8 = vmul.f32 %v1401_v26, %v453_v0  ;;  %v536_v9 = vmul.f32 %v1401_v26, %v473_v1 }
  0xfd   : > { %1008 = vst [vmem:[%s1424_s23 + $0x30] sm:$0xff] %v956_v57   ;;  %v579_v2 = vadd.f32 %v1407_v28, %v543_v62  ;;  %v587_v3 = vadd.f32 %v1407_v28, %v551_v63 }
  0xfe   : > { %v564_v16 = vadd.f32 %v1407_v28, %v528_v8  ;;  %v572_v17 = vadd.f32 %v1407_v28, %v536_v9 }
  0xff   : > { %v611_v6 = vmax.f32 %v579_v2, 0.0  ;;  %v619_v7 = vmax.f32 %v587_v3, 0.0 }
 0x100   : > { %v596_v24 = vmax.f32 %v564_v16, 0.0  ;;  %v604_v25 = vmax.f32 %v572_v17, 0.0 }
 0x101   : > { %v976_v10 = vpack.c.bf16 %v611_v6, %v610_v4  ;;  %v996_v11 = vpack.c.bf16 %v619_v7, %v618_v5 }
 0x102   : > { %v493_v12 = vpop.f32.mrf.mxu2  ;;  %v513_v13 = vpop.f32.mrf.mxu3 }
 0x103   : > { %1012 = vst [vmem:[%s1424_s23 + $0x50] sm:$0xff] %v976_v10   ;;  %v455_v14 = vpop.f32.mrf.mxu0  ;;  %v475_v15 = vpop.f32.mrf.mxu1  ;;  %v544_v22 = vmul.f32 %v1401_v26, %v493_v12  ;;  %v552_v23 = vmul.f32 %v1401_v26, %v513_v13 }
 0x104   : > { %1016 = vst [vmem:[%s1424_s23 + $0x70] sm:$0xff] %v996_v11   ;;  %v529_v18 = vmul.f32 %v1401_v26, %v455_v14  ;;  %v537_v19 = vmul.f32 %v1401_v26, %v475_v15 }
 0x105   : > { %v580_v34 = vadd.f32 %v1407_v28, %v544_v22  ;;  %v588_v35 = vadd.f32 %v1407_v28, %v552_v23 }
 0x106   : > { %v565_v20 = vadd.f32 %v1407_v28, %v529_v18  ;;  %v573_v21 = vadd.f32 %v1407_v28, %v537_v19 }
 0x107   : > { %v612_v40 = vmax.f32 %v580_v34, 0.0  ;;  %v620_v41 = vmax.f32 %v588_v35, 0.0 }
 0x108   : > { %v597_v27 = vmax.f32 %v565_v20, 0.0  ;;  %v605_v29 = vmax.f32 %v573_v21, 0.0 }
 0x10a   : > { %v941_v30 = vpack.c.bf16 %v597_v27, %v596_v24  ;;  %v961_v31 = vpack.c.bf16 %v605_v29, %v604_v25  ;;  %v495_v32 = vpop.f32.mrf.mxu2  ;;  %v515_v33 = vpop.f32.mrf.mxu3 }
 0x10b   : > { %v545_v36 = vmul.f32 %v1401_v26, %v495_v32  ;;  %v553_v37 = vmul.f32 %v1401_v26, %v515_v33 }
 0x10c   : > { %1005 = vst [vmem:[%s1424_s23 + $0x18] sm:$0xff] %v941_v30  }
 0x10d   : > { %1009 = vst [vmem:[%s1424_s23 + $0x38] sm:$0xff] %v961_v31   ;;  %v581_v38 = vadd.f32 %v1407_v28, %v545_v36  ;;  %v589_v39 = vadd.f32 %v1407_v28, %v553_v37 }
 0x10f   : > { %v613_v42 = vmax.f32 %v581_v38, 0.0  ;;  %v621_v26 = vmax.f32 %v589_v39, 0.0 }
 0x111   : > { %v981_v43 = vpack.c.bf16 %v613_v42, %v612_v40  ;;  %v1001_v44 = vpack.c.bf16 %v621_v26, %v620_v41 }
 0x113   : > { %1013 = vst [vmem:[%s1424_s23 + $0x58] sm:$0xff] %v981_v43  }
 0x114   : > { %1017 = vst [vmem:[%s1424_s23 + $0x78] sm:$0xff] %v1001_v44  }
 0x115   : > { %1192 = shalt.err (!%p1189_p10)
}
 0x116   : > { %s1240_s10 = smov 64   ;;  %s1241_s30 = smov 4  }
 0x117   : > { %1048 = dma.vmem_to_hbm [thread:$0]  (%p1336_p3), %s700_s19, 2048, %s702_s13, %s687_s12, %s1240_s10, %s1240_s10, %s1241_s30  }
 0x118 PF: > { %s716_s5 = sand.u32 1, %s1223_s15   ;;  %p1536_p12 = scmp.ge.s32.totalorder %s1235_s18, 2 }
 0x119   : > { %s717_s23 = scalar_lea.sflag [#allocation4], %s716_s5 }
 0x11a   : > { %p1059_p13 = pnand %p1536_p12, %p1302_p6 }
 0x11c   : > { %p1060_p0 = pneg %p1059_p13 }
 0x11e   : > { %1218 = dma.done.wait (%p1060_p0), %s717_s23, 2048  }
 0x11f   : > { %1220 = vsyncadd (%p1060_p0), %s717_s23, 4294965248  ;;  %p18_p5 = scmp.ge.s32.totalorder %s1320_s29, 4   ;;  %s1537_s15 = smov %s1227_s16 }
 0x120   : > { %s1538_s16 = smov %s1231_s17  ;;  %s1539_s17 = smov %s1332_s8 }
 0x121   : > { %s1540_s18 = smov %s1320_s29  ;;  %20 = sbr.rel (!%p18_p5) target bundleno = 6 (0x6), region = 85 }
 0x126   :  { %723 = vsyncpa [#allocation3], 1 }
 0x127   :  { %725 = vsyncpa [#allocation3 + $0x1], 1 }
 0x128   :  { %726 = vsyncpa [#allocation6], 1 }
 0x129   :  { %727 = vsyncpa [#allocation4], 1 }
 0x12a   :  { %729 = vsyncpa [#allocation4 + $0x1], 1 }

</bundles_post_ra>
